<compile_context>
chip_gen: v7x
topology: tpu7x:2x2x1
jax: 0.10.0
libtpu: 0.0.40
codegen_flags: <defaults>
</compile_context>

<pallas_src>
import functools

import jax
import jax.numpy as jnp
from jax.experimental import pallas as pl
from jax.experimental.pallas import tpu as pltpu

EPS = 1e-5  # nn.LayerNorm default


# ----------------------------------------------------------------------------
# Fused kernel: LayerNorm -> q/k/v -> sigmoid token-attention -> proj -> residual
# ----------------------------------------------------------------------------
def saliency_kernel(fea_ref, nw_ref, nb_ref, qw_ref, kw_ref, vw_ref,
                    pw_ref, pb_ref, o_ref, *, num_heads, scale):
    fea = fea_ref[...].astype(jnp.float32)          # (BT, N, C) f32
    BT, N, C = fea.shape
    hd = C // num_heads

    # LayerNorm over channels, computed on the full sublane-aligned slab
    # (the 2 extra tokens are far cheaper than a sublane relayout).
    mu = jnp.mean(fea, axis=-1, keepdims=True)
    var = jnp.mean(jnp.square(fea - mu), axis=-1, keepdims=True)
    xn = (fea - mu) * jax.lax.rsqrt(var + EPS) * nw_ref[0] + nb_ref[0]

    xn_b = xn.astype(jnp.bfloat16)                  # bf16 MXU inputs, f32 acc
    x2d = xn_b.reshape(BT * N, C)                   # N % 8 == 0 -> aligned

    # q for every token; k, v from the saliency token only (scale folded in).
    q = jnp.dot(x2d, qw_ref[...],
                preferred_element_type=jnp.float32).reshape(BT, N, C)
    t_s = xn_b[:, 0, :]                                                # (BT, C)
    k = jnp.dot(t_s, kw_ref[...], preferred_element_type=jnp.float32) * scale
    v = jnp.dot(t_s, vw_ref[...], preferred_element_type=jnp.float32)  # (BT, C)

    if num_heads == 1:
        # Single head: the per-token score is a plain lane reduction, and since
        # attn @ v is the rank-1 outer product gate (x) v, the output projection
        # collapses to (v @ Wproj) on a (BT, C) operand followed by a broadcast
        # scale.  No (BT, N, C) ctx / attn_c temporaries.
        scores = jnp.sum(q * k[:, None, :], axis=-1, keepdims=True)  # (BT,N,1)
        gate = jax.nn.sigmoid(scores)                                # f32
        vp = jnp.dot(v.astype(jnp.bfloat16), pw_ref[...],
                     preferred_element_type=jnp.float32)             # (BT, C)
        out = gate * vp[:, None, :] + pb_ref[0] + fea                # residual
    else:
        # Head-selector masks built directly in both orientations (no XLU
        # transpose).  mask_cn[c, h] = mask_nc[h, c] = 1 iff channel c is in
        # head h.  Score / broadcast matmuls kept in f32 (tiny nh dimension).
        ch_cn = jax.lax.broadcasted_iota(jnp.int32, (C, num_heads), 0)
        hh_cn = jax.lax.broadcasted_iota(jnp.int32, (C, num_heads), 1)
        mask_cn = (ch_cn // hd == hh_cn).astype(jnp.float32)          # (C, nh)
        ch_nc = jax.lax.broadcasted_iota(jnp.int32, (num_heads, C), 1)
        hh_nc = jax.lax.broadcasted_iota(jnp.int32, (num_heads, C), 0)
        mask_nc = (ch_nc // hd == hh_nc).astype(jnp.float32)          # (nh, C)

        p = (q * k[:, None, :]).reshape(BT * N, C)                    # f32
        scores = jnp.dot(p, mask_cn, preferred_element_type=jnp.float32)
        gate = jax.nn.sigmoid(scores)                                 # (BT*N, nh)
        gate_c = jnp.dot(gate, mask_nc,
                         preferred_element_type=jnp.float32).reshape(BT, N, C)
        ctx = (gate_c * v[:, None, :]).astype(jnp.bfloat16)
        out = jnp.dot(ctx.reshape(BT * N, C), pw_ref[...],
                      preferred_element_type=jnp.float32).reshape(BT, N, C)
        out = out + pb_ref[0] + fea

    # The only token-index slice in the kernel: drop the saliency token (0)
    # and the contour token (N-1) at the final store.
    o_ref[...] = out[:, 1:N - 1, :].astype(o_ref.dtype)


def _default_b_tile(batch):
    """Largest divisor of `batch` giving a grid of >= 2 steps."""
    if batch <= 1:
        return 1
    for cand in range(batch // 2, 0, -1):
        if batch % cand == 0:
            return cand
    return 1


def saliency_token_inference_forward(fea, params, *, num_heads=1, qk_scale=None,
                                     b_tile=None,
                                     vmem_limit_bytes=48 * 1024 * 1024):
    B, N, C = fea.shape
    assert N >= 3 and C % num_heads == 0
    hd = C // num_heads
    scale = float(qk_scale) if qk_scale is not None else hd ** -0.5

    # b_tile: keep >= 2 grid steps (megacore sharding on v7x + DMA/compute
    # overlap everywhere) and make b_tile*N -- the flattened MXU M-dim -- as
    # close to a multiple of 128/256 as the batch allows.
    if b_tile is None:
        b_tile = _default_b_tile(B)
    assert B % b_tile == 0

    # Weights fed to the MXU in bf16 (f32 accumulation inside the kernel).
    wdt = jnp.bfloat16
    q_w = params['q_w'].astype(wdt)
    k_w = params['k_w'].astype(wdt)
    v_w = params['v_w'].astype(wdt)
    p_w = params['proj_w'].astype(wdt)

    kernel = functools.partial(saliency_kernel, num_heads=num_heads, scale=scale)

    def const_spec(shape):
        # Whole-array block with a constant index map -> resident in VMEM
        # across all grid steps.
        return pl.BlockSpec(shape, lambda b: (0,) * len(shape))

    itemsize = jnp.dtype(fea.dtype).itemsize
    if num_heads == 1:
        flops = 2 * B * N * C * C + 6 * B * C * C
    else:
        flops = 4 * B * N * C * C + 4 * B * C * C
    cost = pl.CostEstimate(
        flops=int(flops),
        transcendentals=int(B * N * (num_heads + 1)),
        bytes_accessed=int(itemsize * (B * N * C + B * (N - 2) * C)
                           + 2 * 4 * C * C + 4 * 3 * C),
    )

    return pl.pallas_call(
        kernel,
        out_shape=jax.ShapeDtypeStruct((B, N - 2, C), fea.dtype),
        grid=(B // b_tile,),
        in_specs=[
            pl.BlockSpec((b_tile, N, C), lambda b: (b, 0, 0)),   # fea
            const_spec((1, C)), const_spec((1, C)),              # LN weight, bias
            const_spec((C, C)),                                  # Wq (bf16)
            const_spec((C, C)),                                  # Wk (bf16)
            const_spec((C, C)),                                  # Wv (bf16)
            const_spec((C, C)), const_spec((1, C)),              # Wproj, bproj
        ],
        out_specs=pl.BlockSpec((b_tile, N - 2, C), lambda b: (b, 0, 0)),
        compiler_params=pltpu.CompilerParams(
            dimension_semantics=("parallel",),      # batch axis -> megacore
            vmem_limit_bytes=vmem_limit_bytes),
        cost_estimate=cost,
    )(fea, params['norm_w'], params['norm_b'], q_w, k_w, v_w, p_w,
      params['proj_b'])


# ----------------------------------------------------------------------------
# Pure-JAX reference (mirrors the PyTorch forward exactly, all-f32)
# ----------------------------------------------------------------------------
def reference_forward(fea, params, *, num_heads=1, qk_scale=None):
    B, N, C = fea.shape
    hd = C // num_heads
    scale = qk_scale if qk_scale is not None else hd ** -0.5

    mu = jnp.mean(fea, -1, keepdims=True)
    var = jnp.mean(jnp.square(fea - mu), -1, keepdims=True)
    x = (fea - mu) / jnp.sqrt(var + EPS) * params['norm_w'][0] + params['norm_b'][0]

    t_s = x[:, 0:1, :]                                            # (B, 1, C)
    f_s = x[:, 1:-1, :]                                           # (B, N-2, C)
    q = (f_s @ params['q_w']).reshape(B, N - 2, num_heads, hd).transpose(0, 2, 1, 3)
    k = (t_s @ params['k_w']).reshape(B, 1, num_heads, hd).transpose(0, 2, 1, 3)
    v = (t_s @ params['v_w']).reshape(B, 1, num_heads, hd).transpose(0, 2, 1, 3)

    attn = jax.nn.sigmoid((q @ jnp.swapaxes(k, -2, -1)) * scale)  # (B, nh, N-2, 1)
    ctx = (attn @ v).transpose(0, 2, 1, 3).reshape(B, N - 2, C)
    out = ctx @ params['proj_w'] + params['proj_b'][0]
    return out + fea[:, 1:-1, :]


# ----------------------------------------------------------------------------
# Deterministic parameter construction
# ----------------------------------------------------------------------------
def make_params(key, dim):
    ks = jax.random.split(key, 7)
    tn = lambda k, shape, std: jax.random.truncated_normal(k, -2., 2., shape,
                                                           jnp.float32) * std
    return dict(
        norm_w=1.0 + tn(ks[0], (1, dim), 0.1),
        norm_b=tn(ks[1], (1, dim), 0.1),
        q_w=tn(ks[2], (dim, dim), 0.05),
        k_w=tn(ks[3], (dim, dim), 0.05),
        v_w=tn(ks[4], (dim, dim), 0.05),
        proj_w=tn(ks[5], (dim, dim), 0.05),
        proj_b=tn(ks[6], (1, dim), 0.05),
    )


if __name__ == "__main__":
    # Small config: B=8 images, N=32 tokens (saliency token at index 0,
    # contour/extra token at index -1; N % 8 == 0 keeps the slab aligned),
    # C=128 channels (lane-dense output).  Default b_tile -> grid of 2 steps,
    # 4*32 = 128 rows in the flattened MXU M dimension.
    B, N, C = 8, 32, 128

    key = jax.random.PRNGKey(0)
    key, kx, kp = jax.random.split(key, 3)
    fea = jax.random.normal(kx, (B, N, C), jnp.float32)
    params = make_params(kp, C)

    # num_heads = 1 (module default): exercises the fused rank-1 path.
    out1 = jax.block_until_ready(
        saliency_token_inference_forward(fea, params, num_heads=1))
    ref1 = reference_forward(fea, params, num_heads=1)
    assert out1.shape == (B, N - 2, C)
    assert jnp.allclose(out1, ref1, atol=2e-2, rtol=2e-2), (
        "num_heads=1 mismatch, max abs err "
        f"{float(jnp.max(jnp.abs(out1 - ref1)))}")

    # num_heads = 4: exercises the head-mask matmul path.
    out4 = jax.block_until_ready(
        saliency_token_inference_forward(fea, params, num_heads=4))
    ref4 = reference_forward(fea, params, num_heads=4)
    assert jnp.allclose(out4, ref4, atol=2e-2, rtol=2e-2), (
        "num_heads=4 mismatch, max abs err "
        f"{float(jnp.max(jnp.abs(out4 - ref4)))}")

    print("KERNEL_OK")
</pallas_src>

<mosaic_0001>
module attributes {stable_mosaic.version = 11 : i64} {
  func.func @saliency_kernel(%arg0: i32, %arg1: memref<4x32x128xf32, #tpu.memory_space<vmem>>, %arg2: memref<1x128xf32, #tpu.memory_space<vmem>>, %arg3: memref<1x128xf32, #tpu.memory_space<vmem>>, %arg4: memref<128x128xbf16, #tpu.memory_space<vmem>>, %arg5: memref<128x128xbf16, #tpu.memory_space<vmem>>, %arg6: memref<128x128xbf16, #tpu.memory_space<vmem>>, %arg7: memref<128x128xbf16, #tpu.memory_space<vmem>>, %arg8: memref<1x128xf32, #tpu.memory_space<vmem>>, %arg9: memref<4x30x128xf32, #tpu.memory_space<vmem>>) attributes {dimension_semantics = [#tpu.dimension_semantics<parallel>], iteration_bounds = array<i64: 2>, scalar_prefetch = 0 : i64, scratch_operands = 0 : i64, tpu.core_type = #tpu.core_type<tc>, window_params = [{transform_indices = @transform_0, window_bounds = array<i64: 4, 32, 128>}, {pipeline_mode = #tpu.pipeline_mode<synchronous>, transform_indices = @transform_1, window_bounds = array<i64: 1, 128>}, {pipeline_mode = #tpu.pipeline_mode<synchronous>, transform_indices = @transform_2, window_bounds = array<i64: 1, 128>}, {pipeline_mode = #tpu.pipeline_mode<synchronous>, transform_indices = @transform_3, window_bounds = array<i64: 128, 128>}, {pipeline_mode = #tpu.pipeline_mode<synchronous>, transform_indices = @transform_4, window_bounds = array<i64: 128, 128>}, {pipeline_mode = #tpu.pipeline_mode<synchronous>, transform_indices = @transform_5, window_bounds = array<i64: 128, 128>}, {pipeline_mode = #tpu.pipeline_mode<synchronous>, transform_indices = @transform_6, window_bounds = array<i64: 128, 128>}, {pipeline_mode = #tpu.pipeline_mode<synchronous>, transform_indices = @transform_7, window_bounds = array<i64: 1, 128>}, {transform_indices = @transform_8, window_bounds = array<i64: 4, 30, 128>}]} {
    %c0 = arith.constant 0 : index
    %c0_0 = arith.constant 0 : index
    %c0_1 = arith.constant 0 : index
    %0 = vector.load %arg1[%c0, %c0_0, %c0_1] : memref<4x32x128xf32, #tpu.memory_space<vmem>>, vector<4x32x128xf32>
    %cst = arith.constant dense<0.000000e+00> : vector<4x32xf32>
    %1 = vector.multi_reduction <add>, %0, %cst [2] : vector<4x32x128xf32> to vector<4x32xf32>
    %2 = vector.shape_cast %1 : vector<4x32xf32> to vector<4x32x1xf32>
    %cst_2 = arith.constant 1.280000e+02 : f32
    %3 = vector.broadcast %cst_2 : f32 to vector<4x32x1xf32>
    %4 = arith.divf %2, %3 : vector<4x32x1xf32>
    %5 = vector.broadcast %4 : vector<4x32x1xf32> to vector<4x32x128xf32>
    %6 = arith.subf %0, %5 : vector<4x32x128xf32>
    %7 = arith.mulf %6, %6 : vector<4x32x128xf32>
    %cst_3 = arith.constant dense<0.000000e+00> : vector<4x32xf32>
    %8 = vector.multi_reduction <add>, %7, %cst_3 [2] : vector<4x32x128xf32> to vector<4x32xf32>
    %9 = vector.shape_cast %8 : vector<4x32xf32> to vector<4x32x1xf32>
    %cst_4 = arith.constant 1.280000e+02 : f32
    %10 = vector.broadcast %cst_4 : f32 to vector<4x32x1xf32>
    %11 = arith.divf %9, %10 : vector<4x32x1xf32>
    %12 = vector.broadcast %4 : vector<4x32x1xf32> to vector<4x32x128xf32>
    %13 = arith.subf %0, %12 : vector<4x32x128xf32>
    %cst_5 = arith.constant 9.99999974E-6 : f32
    %14 = vector.broadcast %cst_5 : f32 to vector<4x32x1xf32>
    %15 = arith.addf %11, %14 : vector<4x32x1xf32>
    %16 = math.rsqrt %15 : vector<4x32x1xf32>
    %17 = vector.broadcast %16 : vector<4x32x1xf32> to vector<4x32x128xf32>
    %18 = arith.mulf %13, %17 : vector<4x32x128xf32>
    %c0_6 = arith.constant 0 : index
    %c0_7 = arith.constant 0 : index
    %19 = vector.load %arg2[%c0_6, %c0_7] : memref<1x128xf32, #tpu.memory_space<vmem>>, vector<1x128xf32>
    %20 = vector.shape_cast %19 : vector<1x128xf32> to vector<128xf32>
    %21 = vector.shape_cast %20 : vector<128xf32> to vector<1x1x128xf32>
    %22 = vector.broadcast %21 : vector<1x1x128xf32> to vector<4x32x128xf32>
    %23 = arith.mulf %18, %22 : vector<4x32x128xf32>
    %c0_8 = arith.constant 0 : index
    %c0_9 = arith.constant 0 : index
    %24 = vector.load %arg3[%c0_8, %c0_9] : memref<1x128xf32, #tpu.memory_space<vmem>>, vector<1x128xf32>
    %25 = vector.shape_cast %24 : vector<1x128xf32> to vector<128xf32>
    %26 = vector.shape_cast %25 : vector<128xf32> to vector<1x1x128xf32>
    %27 = vector.broadcast %26 : vector<1x1x128xf32> to vector<4x32x128xf32>
    %28 = arith.addf %23, %27 : vector<4x32x128xf32>
    %29 = arith.truncf %28 : vector<4x32x128xf32> to vector<4x32x128xbf16>
    %30 = vector.shape_cast %29 : vector<4x32x128xbf16> to vector<128x128xbf16>
    %c0_10 = arith.constant 0 : index
    %c0_11 = arith.constant 0 : index
    %31 = vector.load %arg4[%c0_10, %c0_11] : memref<128x128xbf16, #tpu.memory_space<vmem>>, vector<128x128xbf16>
    %cst_12 = arith.constant dense<0.000000e+00> : vector<128x128xf32>
    %32 = tpu.matmul %30, %31, %cst_12 {dimension_numbers = #tpu.dot_dimension_numbers<[1], [0], [0], [1], [0, 0, 1, 1], [], []>} : vector<128x128xbf16>, vector<128x128xbf16>, vector<128x128xf32> -> vector<128x128xf32>
    %33 = vector.shape_cast %32 : vector<128x128xf32> to vector<4x32x128xf32>
    %34 = vector.extract_strided_slice %29 {offsets = [0, 0, 0], sizes = [4, 1, 128], strides = [1, 1, 1]} : vector<4x32x128xbf16> to vector<4x1x128xbf16>
    %35 = vector.shape_cast %34 : vector<4x1x128xbf16> to vector<4x128xbf16>
    %c0_13 = arith.constant 0 : index
    %c0_14 = arith.constant 0 : index
    %36 = vector.load %arg5[%c0_13, %c0_14] : memref<128x128xbf16, #tpu.memory_space<vmem>>, vector<128x128xbf16>
    %cst_15 = arith.constant dense<0.000000e+00> : vector<4x128xf32>
    %37 = tpu.matmul %35, %36, %cst_15 {dimension_numbers = #tpu.dot_dimension_numbers<[1], [0], [0], [1], [0, 0, 1, 1], [], []>} : vector<4x128xbf16>, vector<128x128xbf16>, vector<4x128xf32> -> vector<4x128xf32>
    %cst_16 = arith.constant 0.0883883461 : f32
    %38 = vector.broadcast %cst_16 : f32 to vector<4x128xf32>
    %39 = arith.mulf %37, %38 : vector<4x128xf32>
    %c0_17 = arith.constant 0 : index
    %c0_18 = arith.constant 0 : index
    %40 = vector.load %arg6[%c0_17, %c0_18] : memref<128x128xbf16, #tpu.memory_space<vmem>>, vector<128x128xbf16>
    %cst_19 = arith.constant dense<0.000000e+00> : vector<4x128xf32>
    %41 = tpu.matmul %35, %40, %cst_19 {dimension_numbers = #tpu.dot_dimension_numbers<[1], [0], [0], [1], [0, 0, 1, 1], [], []>} : vector<4x128xbf16>, vector<128x128xbf16>, vector<4x128xf32> -> vector<4x128xf32>
    %42 = vector.shape_cast %39 : vector<4x128xf32> to vector<4x1x128xf32>
    %43 = vector.broadcast %42 : vector<4x1x128xf32> to vector<4x32x128xf32>
    %44 = arith.mulf %33, %43 : vector<4x32x128xf32>
    %cst_20 = arith.constant dense<0.000000e+00> : vector<4x32xf32>
    %45 = vector.multi_reduction <add>, %44, %cst_20 [2] : vector<4x32x128xf32> to vector<4x32xf32>
    %46 = vector.shape_cast %45 : vector<4x32xf32> to vector<4x32x1xf32>
    %47 = arith.negf %46 : vector<4x32x1xf32>
    %48 = math.exp %47 : vector<4x32x1xf32>
    %cst_21 = arith.constant 1.000000e+00 : f32
    %49 = vector.broadcast %cst_21 : f32 to vector<4x32x1xf32>
    %50 = arith.addf %49, %48 : vector<4x32x1xf32>
    %51 = arith.divf %49, %50 : vector<4x32x1xf32>
    %52 = arith.truncf %41 : vector<4x128xf32> to vector<4x128xbf16>
    %c0_22 = arith.constant 0 : index
    %c0_23 = arith.constant 0 : index
    %53 = vector.load %arg7[%c0_22, %c0_23] : memref<128x128xbf16, #tpu.memory_space<vmem>>, vector<128x128xbf16>
    %cst_24 = arith.constant dense<0.000000e+00> : vector<4x128xf32>
    %54 = tpu.matmul %52, %53, %cst_24 {dimension_numbers = #tpu.dot_dimension_numbers<[1], [0], [0], [1], [0, 0, 1, 1], [], []>} : vector<4x128xbf16>, vector<128x128xbf16>, vector<4x128xf32> -> vector<4x128xf32>
    %55 = vector.shape_cast %54 : vector<4x128xf32> to vector<4x1x128xf32>
    %56 = vector.broadcast %51 : vector<4x32x1xf32> to vector<4x32x128xf32>
    %57 = vector.broadcast %55 : vector<4x1x128xf32> to vector<4x32x128xf32>
    %58 = arith.mulf %56, %57 : vector<4x32x128xf32>
    %c0_25 = arith.constant 0 : index
    %c0_26 = arith.constant 0 : index
    %59 = vector.load %arg8[%c0_25, %c0_26] : memref<1x128xf32, #tpu.memory_space<vmem>>, vector<1x128xf32>
    %60 = vector.shape_cast %59 : vector<1x128xf32> to vector<128xf32>
    %61 = vector.shape_cast %60 : vector<128xf32> to vector<1x1x128xf32>
    %62 = vector.broadcast %61 : vector<1x1x128xf32> to vector<4x32x128xf32>
    %63 = arith.addf %58, %62 : vector<4x32x128xf32>
    %64 = arith.addf %63, %0 : vector<4x32x128xf32>
    %65 = vector.extract_strided_slice %64 {offsets = [0, 1, 0], sizes = [4, 30, 128], strides = [1, 1, 1]} : vector<4x32x128xf32> to vector<4x30x128xf32>
    %c0_27 = arith.constant 0 : index
    %c0_28 = arith.constant 0 : index
    %c0_29 = arith.constant 0 : index
    %66 = vector.load %arg9[%c0_27, %c0_28, %c0_29] : memref<4x30x128xf32, #tpu.memory_space<vmem>>, vector<4x30x128xf32>
    tpu.vector_store %arg9[%c0_27, %c0_28, %c0_29], %65 {strides = array<i32>} : memref<4x30x128xf32, #tpu.memory_space<vmem>>, vector<4x30x128xf32>,
    return
  }
  func.func @transform_0(%arg0: i32) -> (i32, i32, i32) {
    %c0_i32 = arith.constant 0 : i32
    %c0_i32_0 = arith.constant 0 : i32
    %c0_i32_1 = arith.constant 0 : i32
    return %arg0, %c0_i32, %c0_i32_0 : i32, i32, i32
  }
  func.func @transform_1(%arg0: i32) -> (i32, i32) {
    %c0_i32 = arith.constant 0 : i32
    %c0_i32_0 = arith.constant 0 : i32
    %c0_i32_1 = arith.constant 0 : i32
    return %c0_i32, %c0_i32_0 : i32, i32
  }
  func.func @transform_2(%arg0: i32) -> (i32, i32) {
    %c0_i32 = arith.constant 0 : i32
    %c0_i32_0 = arith.constant 0 : i32
    %c0_i32_1 = arith.constant 0 : i32
    return %c0_i32, %c0_i32_0 : i32, i32
  }
  func.func @transform_3(%arg0: i32) -> (i32, i32) {
    %c0_i32 = arith.constant 0 : i32
    %c0_i32_0 = arith.constant 0 : i32
    %c0_i32_1 = arith.constant 0 : i32
    return %c0_i32, %c0_i32_0 : i32, i32
  }
  func.func @transform_4(%arg0: i32) -> (i32, i32) {
    %c0_i32 = arith.constant 0 : i32
    %c0_i32_0 = arith.constant 0 : i32
    %c0_i32_1 = arith.constant 0 : i32
    return %c0_i32, %c0_i32_0 : i32, i32
  }
  func.func @transform_5(%arg0: i32) -> (i32, i32) {
    %c0_i32 = arith.constant 0 : i32
    %c0_i32_0 = arith.constant 0 : i32
    %c0_i32_1 = arith.constant 0 : i32
    return %c0_i32, %c0_i32_0 : i32, i32
  }
  func.func @transform_6(%arg0: i32) -> (i32, i32) {
    %c0_i32 = arith.constant 0 : i32
    %c0_i32_0 = arith.constant 0 : i32
    %c0_i32_1 = arith.constant 0 : i32
    return %c0_i32, %c0_i32_0 : i32, i32
  }
  func.func @transform_7(%arg0: i32) -> (i32, i32) {
    %c0_i32 = arith.constant 0 : i32
    %c0_i32_0 = arith.constant 0 : i32
    %c0_i32_1 = arith.constant 0 : i32
    return %c0_i32, %c0_i32_0 : i32, i32
  }
  func.func @transform_8(%arg0: i32) -> (i32, i32, i32) {
    %c0_i32 = arith.constant 0 : i32
    %c0_i32_0 = arith.constant 0 : i32
    %c0_i32_1 = arith.constant 0 : i32
    return %arg0, %c0_i32, %c0_i32_0 : i32, i32, i32
  }
}

</mosaic_0001>

<bundles_post_ra>
// kernel: tpu_custom_call.1
= control target key start
LH: loop header
LB: loop body
LE: loop exit
PB: predicated region body
PF: predicated region fallthrough
CT: control target
= control target key end

     0   :  { %13 = vsyncpa [#allocation3], 0  ;;  %s2729_s0 = inlined_call_operand.hbm [shape: f32[8,32,128], index: 0, kind: input, shape index: {}]   ;;  %s2730_s1 = inlined_call_operand.vmem [shape: f32[1,128], index: 1, kind: input, shape index: {}]   ;;  %s2731_s2 = inlined_call_operand.vmem [shape: f32[1,128], index: 2, kind: input, shape index: {}]   ;;  %s2732_s3 = inlined_call_operand.hbm [shape: bf16[128,128], index: 3, kind: input, shape index: {}]   ;;  %s2733_s4 = inlined_call_operand.hbm [shape: bf16[128,128], index: 4, kind: input, shape index: {}]   ;;  %s2734_s5 = inlined_call_operand.hbm [shape: bf16[128,128], index: 5, kind: input, shape index: {}]   ;;  %s2735_s6 = inlined_call_operand.hbm [shape: bf16[128,128], index: 6, kind: input, shape index: {}]   ;;  %s2736_s7 = inlined_call_operand.vmem [shape: f32[1,128], index: 7, kind: input, shape index: {}]   ;;  %s2737_s8 = inlined_call_operand.vmem [shape: f32[8,30,128], index: 8, kind: output, shape index: {}]  }
   0x1   :  { %15 = vsyncpa [#allocation3 + $0x1], 0 }
   0x2   :  { %16 = vsyncpa [#allocation5], 0 }
   0x3   :  { %17 = vsyncpa [#allocation8], 0  ;;  %s2229_s27 = smov 0   ;;  %s2231_s28 = smov 0  }
   0x4   :  { %s2233_s29 = smov 0   ;;  %s2235_s30 = smov 0  }
   0x5 LB: > { %s2740_s9 = sadd.s32 4294967295, %s2170_s30   ;;  %p43_p0 = scmp.ne.s32.totalorder %s2162_s28, %s2158_s27  ;;  %s2170_s30 = sphi %s2235_s30, %s2756_s30   ;;  %s2166_s29 = sphi %s2233_s29, %s2755_s29   ;;  %s2162_s28 = sphi %s2231_s28, %s2754_s28   ;;  %s2158_s27 = sphi %s2229_s27, %s2753_s27  }
   0x6   : > { %p2251_p1 = scmp.eq.s32.totalorder %s2740_s9, 0  ;;  %p1545_p2 = scmp.ge.s32.totalorder %s2170_s30, 1 }
   0x7   : > { %p227_p3 = scmp.lt.s32.totalorder %s2170_s30, 3  ;;  %s2172_s13 = smov [#allocation4]  }
   0x8   : > { %s2743_s10 = scalar_select %p2251_p1, 1, 0 }
   0x9   : > { %p2259_p4 = por %p2251_p1, %p43_p0  ;;  %p2263_p5 = pnand %p1545_p2, %p227_p3 }
   0xa   : > { %s245_s14 = sshll.u32 %s2172_s13, 4  ;;  %s2173_s16 = smov [#allocation7]   ;;  %s2267_s14 = int_to_ptr.vmem [resolvable:$true] %s245_s14 }
   0xb   : > { %s2744_s11 = scalar_select %p2259_p4, 1, 0 }
   0xc   : > { %s2745_s12 = scalar_select %p2263_p5, 1, 0 }
   0xd   : > { %p1773_p6 = pneg %p2263_p5  ;;  %s271_s17 = sshll.u32 %s2173_s16, 4  ;;  %s2277_s17 = int_to_ptr.vmem [resolvable:$true] %s271_s17 }
   0xe   : > { %s2174_s18 = smov [#allocation6]   ;;  %s1986_s22 = scalar_lea.hbm %s2732_s3, 1024 }
   0xf   : > { %p2273_p7 = pnand %p1773_p6, %p2251_p1  ;;  %s2279_s19 = sshll.u32 %s2174_s18, 4  ;;  %s259_s19 = int_to_ptr.vmem [resolvable:$true] %s2279_s19 }
  0x10   : > { %p1987_p8 = scmp.ne.s32.totalorder %s2732_s3, %s1986_s22  ;;  %p1993_p12 = scmp.lt.u32.totalorder %s1986_s22, %s2732_s3 }
  0x11   : > { %p2289_p9 = pneg %p2273_p7 }
  0x13   : > { %p1989_p10 = pnand %p2289_p9, %p1987_p8 }
  0x15   : > { %p1990_p11 = pneg %p1989_p10 }
  0x17   : > { %p1995_p13 = pnand %p1993_p12, %p1990_p11 }
  0x19   : > { %1998 = shalt.err (!%p1995_p13)
}
  0x1a   : > { %s1999_s13 = scalar_lea.vmem %s2267_s14, 1024  ;;  %p2007_p6 = scmp.lt.s32.totalorder %s2267_s14, %s2267_s14 }
  0x1b   : > { %p2000_p0 = scmp.ne.s32.totalorder %s2267_s14, %s1999_s13  ;;  %p2008_p1 = scmp.lt.s32.totalorder %s1999_s13, %s1999_s13 }
  0x1d   : > { %p2002_p2 = pnand %p2000_p0, %p2289_p9  ;;  %p2009_p8 = por %p2008_p1, %p2007_p6 }
  0x1f   : > { %p2003_p3 = pneg %p2002_p2 }
  0x21   : > { %p2010_p10 = pnand %p2009_p8, %p2003_p3 }
  0x23   : > { %2013 = shalt.err (!%p2010_p10)
}
  0x24   : > { %s2175_s16 = smov 64   ;;  %s2176_s18 = smov 4  }
  0x25   : > { %1776 = dma.hbm_to_vmem [thread:$0]  (!%p2273_p7), %s2732_s3, 1024, %s2267_s14, [#allocation5], %s2175_s16, %s2175_s16, %s2176_s18  }
  0x26   : > { %s2014_s24 = scalar_lea.hbm %s2734_s5, 1024 }
  0x27   : > { %p2015_p1 = scmp.ne.s32.totalorder %s2734_s5, %s2014_s24  ;;  %p2021_p13 = scmp.lt.u32.totalorder %s2014_s24, %s2734_s5 }
  0x29   : > { %p2017_p11 = pnand %p2015_p1, %p2289_p9 }
  0x2b   : > { %p2018_p12 = pneg %p2017_p11 }
  0x2d   : > { %p2023_p0 = pnand %p2021_p13, %p2018_p12 }
  0x2f   : > { %2026 = shalt.err (!%p2023_p0)
}
  0x30   : > { %s2027_s14 = scalar_lea.vmem %s2277_s17, 1024  ;;  %p2035_p8 = scmp.lt.s32.totalorder %s2277_s17, %s2277_s17 }
  0x31   : > { %p2028_p2 = scmp.ne.s32.totalorder %s2277_s17, %s2027_s14  ;;  %p2036_p10 = scmp.lt.s32.totalorder %s2027_s14, %s2027_s14 }
  0x33   : > { %p2030_p3 = pnand %p2028_p2, %p2289_p9  ;;  %p2037_p1 = por %p2036_p10, %p2035_p8 }
  0x35   : > { %p2031_p6 = pneg %p2030_p3 }
  0x37   : > { %p2038_p11 = pnand %p2037_p1, %p2031_p6 }
  0x39   : > { %2041 = shalt.err (!%p2038_p11)
}
  0x3a   : > { %1782 = dma.hbm_to_vmem [thread:$0]  (!%p2273_p7), %s2734_s5, 1024, %s2277_s17, [#allocation8], %s2175_s16, %s2175_s16, %s2176_s18  }
  0x3b   : > { %s2042_s23 = scalar_lea.hbm %s2733_s4, 1024 }
  0x3c   : > { %p2043_p12 = scmp.ne.s32.totalorder %s2733_s4, %s2042_s23  ;;  %p2049_p2 = scmp.lt.u32.totalorder %s2042_s23, %s2733_s4 }
  0x3e   : > { %p2045_p13 = pnand %p2043_p12, %p2289_p9 }
  0x40   : > { %p2046_p0 = pneg %p2045_p13 }
  0x42   : > { %p2051_p3 = pnand %p2049_p2, %p2046_p0 }
  0x44   : > { %2054 = shalt.err (!%p2051_p3)
}
  0x45   : > { %s2055_s14 = scalar_lea.vmem %s259_s19, 1024  ;;  %p2063_p1 = scmp.lt.s32.totalorder %s259_s19, %s259_s19 }
  0x46   : > { %p2056_p6 = scmp.ne.s32.totalorder %s259_s19, %s2055_s14  ;;  %p2064_p11 = scmp.lt.s32.totalorder %s2055_s14, %s2055_s14 }
  0x48   : > { %p2058_p8 = pnand %p2056_p6, %p2289_p9  ;;  %p2065_p4 = por %p2064_p11, %p2063_p1 }
  0x4a   : > { %p2059_p10 = pneg %p2058_p8 }
  0x4c   : > { %p2066_p5 = pnand %p2065_p4, %p2059_p10 }
  0x4e   : > { %2069 = shalt.err (!%p2066_p5)
}
  0x4f   : > { %1779 = dma.hbm_to_vmem [thread:$0]  (!%p2273_p7), %s2733_s4, 1024, %s259_s19, [#allocation5], %s2175_s16, %s2175_s16, %s2176_s18  }
  0x50   : > { %s2177_s20 = smov [#allocation9]   ;;  %s2070_s24 = scalar_lea.hbm %s2735_s6, 1024 }
  0x51   : > { %s284_s21 = sshll.u32 %s2177_s20, 4  ;;  %p2071_p4 = scmp.ne.s32.totalorder %s2735_s6, %s2070_s24  ;;  %s285_s21 = int_to_ptr.vmem [resolvable:$true] %s284_s21 }
  0x52   : > { %p2077_p13 = scmp.lt.u32.totalorder %s2070_s24, %s2735_s6 }
  0x53   : > { %p2073_p5 = pnand %p2071_p4, %p2289_p9 }
  0x55   : > { %p2074_p12 = pneg %p2073_p5 }
  0x57   : > { %p2079_p0 = pnand %p2077_p13, %p2074_p12 }
  0x59   : > { %2082 = shalt.err (!%p2079_p0)
}
  0x5a   : > { %s2083_s19 = scalar_lea.vmem %s285_s21, 1024  ;;  %p2091_p8 = scmp.lt.s32.totalorder %s285_s21, %s285_s21 }
  0x5b   : > { %p2084_p2 = scmp.ne.s32.totalorder %s285_s21, %s2083_s19  ;;  %p2092_p10 = scmp.lt.s32.totalorder %s2083_s19, %s2083_s19 }
  0x5d   : > { %p2086_p3 = pnand %p2084_p2, %p2289_p9  ;;  %p2093_p1 = por %p2092_p10, %p2091_p8 }
  0x5f   : > { %p2087_p6 = pneg %p2086_p3 }
  0x61   : > { %p2094_p11 = pnand %p2093_p1, %p2087_p6 }
  0x63   : > { %2097 = shalt.err (!%p2094_p11)
}
  0x64   : > { %1785 = dma.hbm_to_vmem [thread:$0]  (!%p2273_p7), %s2735_s6, 1024, %s285_s21, [#allocation8], %s2175_s16, %s2175_s16, %s2176_s18  }
  0x65   : > { %s2383_s25 = sadd.s32 1, %s2170_s30   ;;  %s30_s15 = sadd.s32 1, %s2166_s29 }
  0x66   : > { %s27_s20 = ssub.s32 %s2170_s30, %s2383_s25  ;;  %p37_p9 = scmp.ne.s32.totalorder %s2166_s29, %s2162_s28 }
  0x67   : > { %p28_p4 = scmp.eq.s32.totalorder %s27_s20, 0  ;;  %p38_p5 = scmp.eq.s32.totalorder %s2170_s30, 0 }
  0x68   : > { %p1794_p12 = scmp.lt.s32.totalorder %s2170_s30, 2  ;;  %s301_s22 = sand.u32 1, %s2166_s29  }
  0x69   : > { %s2394_s23 = scalar_select %p28_p4, %s2166_s29, %s30_s15  }
  0x6a   : > { %p39_p13 = por %p38_p5, %p37_p9  ;;  %s1551_s24 = sshll.u32 %s301_s22, 7 }
  0x6b   : > { %s1618_s26 = sshll.u32 %s2170_s30, 11  ;;  %s305_s16 = scalar_lea.vmem [#allocation2], %s1551_s24 }
  0x6c   : > { %s2400_s14 = scalar_lea.hbm %s2729_s0, %s1618_s26  ;;  %s313_s18 = sshll.u32 %s305_s16, 4  ;;  %s2406_s18 = int_to_ptr.vmem [resolvable:$true] %s313_s18 }
  0x6d   : > { %p2402_p7 = pnand %p1794_p12, %p39_p13  ;;  %s2408_s19 = scalar_lea.sflag [#allocation3], %s301_s22 }
  0x6e   : > { %s2098_s17 = scalar_lea.hbm %s2400_s14, 2048  ;;  %s2103_s20 = scalar_lea.hbm %s2729_s0, 4096 }
  0x6f   : > { %p2099_p0 = scmp.ne.s32.totalorder %s2400_s14, %s2098_s17  ;;  %p2100_p2 = pneg %p2402_p7 }
  0x70   : > { %p2104_p8 = scmp.lt.u32.totalorder %s2400_s14, %s2729_s0  ;;  %p2105_p10 = scmp.lt.u32.totalorder %s2103_s20, %s2098_s17 }
  0x71   : > { %p2101_p3 = pnand %p2100_p2, %p2099_p0  ;;  %p2107_p11 = scmp.lt.u32.totalorder %s2098_s17, %s2400_s14 }
  0x72   : > { %p2106_p1 = por %p2105_p10, %p2104_p8 }
  0x73   : > { %p2102_p6 = pneg %p2101_p3 }
  0x74   : > { %p2108_p9 = por %p2107_p11, %p2106_p1 }
  0x76   : > { %p2109_p4 = pnand %p2108_p9, %p2102_p6 }
  0x78   : > { %2112 = shalt.err (!%p2109_p4)
}
  0x79   : > { %s2113_s22 = scalar_lea.vmem %s2406_s18, 2048  ;;  %s2178_s27 = smov [#allocation2]  }
  0x7a   : > { %p2114_p5 = scmp.ne.s32.totalorder %s2406_s18, %s2113_s22  ;;  %s2118_s13 = sshll.u32 %s2178_s27, 4  ;;  %s2119_s13 = int_to_ptr.vmem [resolvable:$false] %s2118_s13 }
  0x7b   : > { %s2120_s16 = scalar_lea.vmem %s2119_s13, 4096  ;;  %p2121_p0 = scmp.lt.s32.totalorder %s2406_s18, %s2119_s13 }
  0x7c   : > { %p2116_p12 = pnand %p2114_p5, %p2100_p2  ;;  %p2122_p3 = scmp.lt.s32.totalorder %s2120_s16, %s2113_s22 }
  0x7e   : > { %p2117_p13 = pneg %p2116_p12  ;;  %p2123_p8 = por %p2122_p3, %p2121_p0 }
  0x80   : > { %p2124_p10 = pnand %p2123_p8, %p2117_p13 }
  0x82   : > { %2127 = shalt.err (!%p2124_p10)
}
  0x83   : > { %s2179_s17 = smov 128   ;;  %s2180_s9 = smov 8  }
  0x84   : > { %1789 = dma.hbm_to_vmem [thread:$0]  (!%p2402_p7), %s2400_s14, 2048, %s2406_s18, %s2408_s19, %s2179_s17, %s2179_s17, %s2180_s9  }
  0x85   : > { %p2749_p2 = scmp.ne.s32.totalorder %s2745_s12, 0 }
  0x86   : > { %s327_s15 = sand.u32 (!%p2749_p2), 1, %s2162_s28   ;;  %p2750_p6 = scmp.ne.s32.totalorder (!%p2749_p2), %s2744_s11, 0 }
  0x87   : > { %325 = sbr.rel (%p2749_p2) target bundleno = 954 (0x3ba), region = 52  ;;  %s1556_s20 = sshll.u32 (!%p2749_p2), %s327_s15, 7 }
  0x88   : > { %s328_s24 = scalar_lea.sflag (!%p2749_p2), [#allocation3], %s327_s15  ;;  %s2439_s26 = scalar_lea.vmem (!%p2749_p2), [#allocation2], %s1556_s20 }
  0x8e   : > { %2145 = dma.done.wait (%p2750_p6), %s328_s24, 2048  }
  0x8f   : > { %2147 = vsyncadd (%p2750_p6), %s328_s24, 4294965248  ;;  %p2751_p1 = scmp.ne.s32.totalorder %s2743_s10, 0 }
  0x91   : > { %2149 = dma.done.wait (%p2751_p1), [#allocation5], 2048  }
  0x92   : > { %2151 = vsyncadd (%p2751_p1), [#allocation5], 4294965248 }
  0x93   : > { %2153 = dma.done.wait (%p2751_p1), [#allocation8], 2048  }
  0x94   : > { %2155 = vsyncadd (%p2751_p1), [#allocation8], 4294965248  ;;  %v390_v0 = vld [vmem:[%s2439_s26] sm:$0xff]  ;;  %v392_v1 = vld [vmem:[%s2439_s26 + $0x10] sm:$0xff]  ;;  %vm2182_vm0 = vmmov 0   ;;  %vm823_vm1 = vcmask 1041409  }
  0x95   : > { %406 = vadd.xlane.f32.xlu0 %v390_v0  ;;  %410 = vadd.xlane.f32.xlu1 %v392_v1  ;;  %v391_v2 = vld [vmem:[%s2439_s26 + $0x8] sm:$0xff]  ;;  %v393_v3 = vld [vmem:[%s2439_s26 + $0x18] sm:$0xff]  ;;  %v394_v4 = vld [vmem:[%s2439_s26 + $0x20] sm:$0xff]  ;;  %vm826_vm2 = vcmask 1042434   ;;  %vm829_vm3 = vcmask 1043459   ;;  %s2752_s18 = sadd.s32 4294967295, %s2170_s30  }
  0x96   : > { %v395_v5 = vld [vmem:[%s2439_s26 + $0x28] sm:$0xff]  ;;  %v396_v6 = vld [vmem:[%s2439_s26 + $0x30] sm:$0xff]  ;;  %v397_v7 = vld [vmem:[%s2439_s26 + $0x38] sm:$0xff]  ;;  %s1561_s21 = sshll.u32 %s2752_s18, 2 }
  0x97   : > { %v398_v8 = vld [vmem:[%s2439_s26 + $0x40] sm:$0xff]  ;;  %v2463_v9 = vld [vmem:[%s2439_s26 + $0x48] sm:$0xff]  ;;  %v2466_v10 = vld [vmem:[%s2439_s26 + $0x50] sm:$0xff]  ;;  %p383_p7 = scmp.lt.s32.totalorder %s1561_s21, 7 }
  0x98   : > { %v2469_v11 = vld [vmem:[%s2439_s26 + $0x58] sm:$0xff]  ;;  %v2473_v12 = vld [vmem:[%s2439_s26 + $0x60] sm:$0xff]  ;;  %v2476_v13 = vld [vmem:[%s2439_s26 + $0x68] sm:$0xff] }
  0x99   : > { %408 = vadd.xlane.f32.xlu0 %v391_v2  ;;  %412 = vadd.xlane.f32.xlu1 %v393_v3  ;;  %v2481_v14 = vld [vmem:[%s2439_s26 + $0x70] sm:$0xff]  ;;  %v2486_v15 = vld [vmem:[%s2439_s26 + $0x78] sm:$0xff]  ;;  %v1842_v16 = vld [vmem:[#allocation4] sm:$0xff]   ;;  %s2758_s21 = smov (!%p383_p7, %s1561_s21), 7 }
  0x9a   : > { %1663 = vmatprep.subr.bf16.mxu0 %v1842_v16  ;;  %v1843_v60 = vld [vmem:[#allocation4 + $0x8] sm:$0xff]   ;;  %s1619_s22 = sshll.u32 %s2758_s21, 5 }
  0x9b   : > { %1664 = vmatpush3.bf16.msra.mxu0 %v1842_v16  ;;  %s2682_s16 = scalar_lea.vmem %s2737_s8, %s1619_s22 }
  0x9c   : > { %1665 = vmatprep.subr.bf16.mxu0 %v1843_v60 }
  0x9d   : > { %414 = vadd.xlane.f32.xlu0 %v394_v4  ;;  %416 = vadd.xlane.f32.xlu1 %v395_v5 }
  0x9f   : > { %1666 = vmatpush3.bf16.msra.mxu0 %v1843_v60 }
  0xa1   : > { %418 = vadd.xlane.f32.xlu0 %v396_v6  ;;  %420 = vadd.xlane.f32.xlu1 %v397_v7 }
  0xa5   : > { %422 = vadd.xlane.f32.xlu0 %v398_v8  ;;  %424 = vadd.xlane.f32.xlu1 %v2463_v9 }
  0xa9   : > { %426 = vadd.xlane.f32.xlu0 %v2466_v10  ;;  %428 = vadd.xlane.f32.xlu1 %v2469_v11 }
  0xad   : > { %430 = vadd.xlane.f32.xlu0 %v2473_v12  ;;  %432 = vadd.xlane.f32.xlu1 %v2476_v13 }
  0xb1   : > { %434 = vadd.xlane.f32.xlu0 %v2481_v14  ;;  %436 = vadd.xlane.f32.xlu1 %v2486_v15 }
 0x122   : > { %v407_v17 = vpop.xlane.xlu0 %406  ;;  %v411_v18 = vpop.xlane.xlu1 %410 }
 0x123   : > { %v439_v19 = vmul.f32 0.0078125, %v407_v17  ;;  %v441_v20 = vmul.f32 0.0078125, %v411_v18 }
 0x125   : > { %v2490_v21 = vsub.f32 %v390_v0, %v439_v19  ;;  %v2492_v22 = vsub.f32 %v392_v1, %v441_v20  ;;  %v1845_v19 = vld [vmem:[#allocation4 + $0x18] sm:$0xff]  }
 0x126   : > { %v409_v23 = vpop.xlane.xlu0 %408  ;;  %v413_v24 = vpop.xlane.xlu1 %412 }
 0x127   : > { %v440_v25 = vmul.f32 0.0078125, %v409_v23  ;;  %v471_v26 = vmul.f32 %v2490_v21, %v2490_v21  ;;  %v442_v27 = vmul.f32 0.0078125, %v413_v24  ;;  %v473_v30 = vmul.f32 %v2492_v22, %v2492_v22  ;;  %v1846_v23 = vld [vmem:[#allocation4 + $0x20] sm:$0xff]   ;;  %v1848_v24 = vld [vmem:[#allocation4 + $0x30] sm:$0xff]  }
 0x129   : > { %v2496_v28 = vsub.f32 %v391_v2, %v440_v25  ;;  %487 = vadd.xlane.f32.xlu0 %v471_v26  ;;  %v2498_v29 = vsub.f32 %v393_v3, %v442_v27  ;;  %v1849_v25 = vld [vmem:[#allocation4 + $0x38] sm:$0xff]   ;;  %v1850_v26 = vld [vmem:[#allocation6] sm:$0xff]   ;;  %v2181_v27 = vmov 0.0  }
 0x12a   : > { %v415_v31 = vpop.xlane.xlu0 %414  ;;  %v417_v32 = vpop.xlane.xlu1 %416  ;;  %1695 = vmatprep.subr.bf16.mxu1 %v2181_v27  ;;  %1711 = vmatprep.mubr.msk.bf16.mxu1 %vm2182_vm0, %v2181_v27 }
 0x12b   : > { %v443_v33 = vmul.f32 0.0078125, %v415_v31  ;;  %v472_v34 = vmul.f32 %v2496_v28, %v2496_v28  ;;  %v444_v35 = vmul.f32 0.0078125, %v417_v32  ;;  %v474_v38 = vmul.f32 %v2498_v29, %v2498_v29  ;;  %1696 = vmatpush3.bf16.msra.mxu1 %v1850_v26  ;;  %v1853_v31 = vld [vmem:[#allocation6 + $0x10] sm:$0xff]   ;;  %v1855_v32 = vld [vmem:[#allocation6 + $0x18] sm:$0xff]  }
 0x12c   : > { %1697 = vmatprep.subr.bf16.mxu1 %v2181_v27 }
 0x12d   : > { %v2504_v36 = vsub.f32 %v394_v4, %v443_v33  ;;  %491 = vadd.xlane.f32.xlu0 %v473_v30  ;;  %489 = vadd.xlane.f32.xlu1 %v472_v34  ;;  %v2506_v37 = vsub.f32 %v395_v5, %v444_v35  ;;  %v1851_v30 = vld [vmem:[#allocation6 + $0x8] sm:$0xff]   ;;  %v1857_v33 = vld [vmem:[#allocation6 + $0x20] sm:$0xff]   ;;  %v1861_v35 = vld [vmem:[#allocation6 + $0x30] sm:$0xff]  }
 0x12e   : > { %v419_v39 = vpop.xlane.xlu0 %418  ;;  %v421_v40 = vpop.xlane.xlu1 %420  ;;  %v1859_v34 = vld [vmem:[#allocation6 + $0x28] sm:$0xff]  }
 0x12f   : > { %v445_v41 = vmul.f32 0.0078125, %v419_v39  ;;  %v475_v42 = vmul.f32 %v2504_v36, %v2504_v36  ;;  %v446_v43 = vmul.f32 0.0078125, %v421_v40  ;;  %v476_v46 = vmul.f32 %v2506_v37, %v2506_v37  ;;  %1698 = vmatpush3.bf16.msra.mxu1 %v1851_v30 }
 0x130   : > { %1699 = vmatprep.subr.bf16.mxu1 %v2181_v27 }
 0x131   : > { %v2512_v44 = vsub.f32 %v396_v6, %v445_v41  ;;  %493 = vadd.xlane.f32.xlu1 %v474_v38  ;;  %495 = vadd.xlane.f32.xlu0 %v475_v42  ;;  %v2514_v45 = vsub.f32 %v397_v7, %v446_v43  ;;  %v1863_v38 = vld [vmem:[#allocation6 + $0x38] sm:$0xff]  }
 0x132   : > { %v423_v47 = vpop.xlane.xlu0 %422  ;;  %v425_v48 = vpop.xlane.xlu1 %424 }
 0x133   : > { %v447_v49 = vmul.f32 0.0078125, %v423_v47  ;;  %v477_v50 = vmul.f32 %v2512_v44, %v2512_v44  ;;  %v448_v51 = vmul.f32 0.0078125, %v425_v48  ;;  %v478_v54 = vmul.f32 %v2514_v45, %v2514_v45  ;;  %1700 = vmatpush3.bf16.msra.mxu1 %v1853_v31 }
 0x134   : > { %1701 = vmatprep.subr.bf16.mxu1 %v2181_v27 }
 0x135   : > { %v2520_v52 = vsub.f32 %v398_v8, %v447_v49  ;;  %497 = vadd.xlane.f32.xlu1 %v476_v46  ;;  %499 = vadd.xlane.f32.xlu0 %v477_v50  ;;  %v2523_v53 = vsub.f32 %v2463_v9, %v448_v51  ;;  %v1844_v8 = vld [vmem:[#allocation4 + $0x10] sm:$0xff]  }
 0x136   : > { %v427_v55 = vpop.xlane.xlu0 %426  ;;  %v429_v56 = vpop.xlane.xlu1 %428  ;;  %1667 = vmatprep.subr.bf16.mxu0 %v1844_v8 }
 0x137   : > { %v449_v57 = vmul.f32 0.0078125, %v427_v55  ;;  %v479_v58 = vmul.f32 %v2520_v52, %v2520_v52  ;;  %v450_v59 = vmul.f32 0.0078125, %v429_v56  ;;  %v480_v63 = vmul.f32 %v2523_v53, %v2523_v53  ;;  %1668 = vmatpush3.bf16.msra.mxu0 %v1844_v8  ;;  %1702 = vmatpush3.bf16.msra.mxu1 %v1855_v32 }
 0x138   : > { %1669 = vmatprep.subr.bf16.mxu0 %v1845_v19  ;;  %1703 = vmatprep.subr.bf16.mxu1 %v2181_v27 }
 0x139   : > { %v2530_v61 = vsub.f32 %v2466_v10, %v449_v57  ;;  %501 = vadd.xlane.f32.xlu1 %v478_v54  ;;  %503 = vadd.xlane.f32.xlu0 %v479_v58  ;;  %v2533_v62 = vsub.f32 %v2469_v11, %v450_v59 }
 0x13a   : > { %v431_v0 = vpop.xlane.xlu0 %430  ;;  %v433_v1 = vpop.xlane.xlu1 %432 }
 0x13b   : > { %v451_v2 = vmul.f32 0.0078125, %v431_v0  ;;  %v481_v3 = vmul.f32 %v2530_v61, %v2530_v61  ;;  %v452_v4 = vmul.f32 0.0078125, %v433_v1  ;;  %v482_v7 = vmul.f32 %v2533_v62, %v2533_v62  ;;  %1670 = vmatpush3.bf16.msra.mxu0 %v1845_v19  ;;  %1704 = vmatpush3.bf16.msra.mxu1 %v1857_v33 }
 0x13c   : > { %1671 = vmatprep.subr.bf16.mxu0 %v1846_v23  ;;  %1705 = vmatprep.subr.bf16.mxu1 %v2181_v27 }
 0x13d   : > { %v2540_v5 = vsub.f32 %v2473_v12, %v451_v2  ;;  %505 = vadd.xlane.f32.xlu1 %v480_v63  ;;  %507 = vadd.xlane.f32.xlu0 %v481_v3  ;;  %v2543_v6 = vsub.f32 %v2476_v13, %v452_v4 }
 0x13e   : > { %v435_v9 = vpop.xlane.xlu0 %434  ;;  %v437_v10 = vpop.xlane.xlu1 %436 }
 0x13f   : > { %v453_v11 = vmul.f32 0.0078125, %v435_v9  ;;  %v483_v16 = vmul.f32 %v2540_v5, %v2540_v5  ;;  %v454_v17 = vmul.f32 0.0078125, %v437_v10  ;;  %v484_v18 = vmul.f32 %v2543_v6, %v2543_v6  ;;  %1672 = vmatpush3.bf16.msra.mxu0 %v1846_v23  ;;  %1706 = vmatpush3.bf16.msra.mxu1 %v1859_v34  ;;  %v2577_v10 = vld [vmem:[%s2730_s1] ss:$0 sm:$0xff] }
 0x140   : > { %1707 = vmatprep.subr.bf16.mxu1 %v2181_v27 }
 0x141   : > { %v2550_v12 = vsub.f32 %v2481_v14, %v453_v11  ;;  %509 = vadd.xlane.f32.xlu1 %v482_v7  ;;  %511 = vadd.xlane.f32.xlu0 %v483_v16  ;;  %v2553_v13 = vsub.f32 %v2486_v15, %v454_v17  ;;  %v1847_v15 = vld [vmem:[#allocation4 + $0x28] sm:$0xff]  }
 0x142   : > { %1673 = vmatprep.subr.bf16.mxu0 %v1847_v15 }
 0x143   : > { %v485_v20 = vmul.f32 %v2550_v12, %v2550_v12  ;;  %v486_v14 = vmul.f32 %v2553_v13, %v2553_v13  ;;  %1674 = vmatpush3.bf16.msra.mxu0 %v1847_v15  ;;  %1708 = vmatpush3.bf16.msra.mxu1 %v1861_v35 }
 0x144   : > { %1675 = vmatprep.subr.bf16.mxu0 %v1848_v24  ;;  %1709 = vmatprep.subr.bf16.mxu1 %v2181_v27 }
 0x145   : > { %513 = vadd.xlane.f32.xlu1 %v484_v18  ;;  %515 = vadd.xlane.f32.xlu0 %v485_v20 }
 0x147   : > { %1676 = vmatpush3.bf16.msra.mxu0 %v1848_v24  ;;  %1710 = vmatpush3.bf16.msra.mxu1 %v1863_v38  ;;  %v2584_v24 = vld [vmem:[%s2731_s2] ss:$0 sm:$0xff] }
 0x148   : > { %1677 = vmatprep.subr.bf16.mxu0 %v1849_v25  ;;  %1735 = vmatprep.subr.bf16.mxu1 %v2181_v27 }
 0x149   : > { %517 = vadd.xlane.f32.xlu1 %v486_v14 }
 0x14b   : > { %1678 = vmatpush3.bf16.msra.mxu0 %v1849_v25 }
 0x14c   : > { %1715 = vmatprep.subr.bf16.mxu0 %v2181_v27 }
 0x1b6   : > { %v488_v39 = vpop.xlane.xlu0 %487 }
 0x1b7   : > { %v519_v40 = vmul.f32 0.0078125, %v488_v39 }
 0x1b9   : > { %v535_v41 = vadd.f32 1e-05, %v519_v40 }
 0x1ba   : > { %v490_v42 = vpop.xlane.xlu1 %489  ;;  %v492_v43 = vpop.xlane.xlu0 %491 }
 0x1bb   : > { %1874 = vrsqrt.f32 %v535_v41  ;;  %v520_v46 = vmul.f32 0.0078125, %v490_v42  ;;  %v521_v47 = vmul.f32 0.0078125, %v492_v43 }
 0x1bd   : > { %v536_v48 = vadd.f32 1e-05, %v520_v46  ;;  %v537_v49 = vadd.f32 1e-05, %v521_v47 }
 0x1be   : > { %v494_v50 = vpop.xlane.xlu1 %493  ;;  %v496_v51 = vpop.xlane.xlu0 %495 }
 0x1bf   : > { %1876 = vrsqrt.f32 %v536_v48  ;;  %v522_v54 = vmul.f32 0.0078125, %v494_v50  ;;  %v523_v55 = vmul.f32 0.0078125, %v496_v51 }
 0x1c0   : > { %1878 = vrsqrt.f32 %v537_v49 }
 0x1c1   : > { %v538_v56 = vadd.f32 1e-05, %v522_v54  ;;  %v539_v57 = vadd.f32 1e-05, %v523_v55 }
 0x1c2   : > { %v498_v58 = vpop.xlane.xlu1 %497  ;;  %v500_v59 = vpop.xlane.xlu0 %499 }
 0x1c3   : > { %1880 = vrsqrt.f32 %v538_v56  ;;  %v524_v60 = vmul.f32 0.0078125, %v498_v58  ;;  %v525_v63 = vmul.f32 0.0078125, %v500_v59 }
 0x1c4   : > { %1882 = vrsqrt.f32 %v539_v57 }
 0x1c5   : > { %v1875_v0 = vpop.eup %1874  ;;  %v540_v1 = vadd.f32 1e-05, %v524_v60  ;;  %v541_v2 = vadd.f32 1e-05, %v525_v63 }
 0x1c6   : > { %v502_v3 = vpop.xlane.xlu1 %501  ;;  %v504_v4 = vpop.xlane.xlu0 %503  ;;  %v567_v7 = vmul.f32 %v1875_v0, %v2490_v21 }
 0x1c7   : > { %1884 = vrsqrt.f32 %v540_v1  ;;  %v526_v8 = vmul.f32 0.0078125, %v502_v3  ;;  %v527_v9 = vmul.f32 0.0078125, %v504_v4 }
 0x1c8   : > { %1886 = vrsqrt.f32 %v541_v2  ;;  %v590_v23 = vmul.f32 %v2577_v10, %v567_v7 }
 0x1c9   : > { %v1877_v11 = vpop.eup %1876  ;;  %v542_v16 = vadd.f32 1e-05, %v526_v8  ;;  %v543_v17 = vadd.f32 1e-05, %v527_v9 }
 0x1ca   : > { %v1879_v18 = vpop.eup %1878  ;;  %v506_v19 = vpop.xlane.xlu1 %505  ;;  %v568_v14 = vmul.f32 %v1877_v11, %v2496_v28  ;;  %v613_v35 = vadd.f32 %v2584_v24, %v590_v23 }
 0x1cb   : > { %v508_v20 = vpop.xlane.xlu0 %507  ;;  %1888 = vrsqrt.f32 %v542_v16  ;;  %v528_v21 = vmul.f32 0.0078125, %v506_v19  ;;  %v569_v25 = vmul.f32 %v1879_v18, %v2492_v22  ;;  %v1854_v16 = vld [vmem:[#allocation7 + $0x8] sm:$0xff]  }
 0x1cc   : > { %v529_v15 = vmul.f32 0.0078125, %v508_v20  ;;  %1890 = vrsqrt.f32 %v543_v17  ;;  %v591_v26 = vmul.f32 %v2577_v10, %v568_v14 }
 0x1cd   : > { %v1881_v30 = vpop.eup %1880  ;;  %v544_v31 = vadd.f32 1e-05, %v528_v21  ;;  %v592_v40 = vmul.f32 %v2577_v10, %v569_v25 }
 0x1ce   : > { %v545_v32 = vadd.f32 1e-05, %v529_v15  ;;  %v1883_v33 = vpop.eup %1882  ;;  %v510_v28 = vpop.xlane.xlu1 %509  ;;  %v614_v38 = vadd.f32 %v2584_v24, %v591_v26  ;;  %v570_v39 = vmul.f32 %v1881_v30, %v2498_v29 }
 0x1cf   : > { %v512_v34 = vpop.xlane.xlu0 %511  ;;  %1892 = vrsqrt.f32 %v544_v31  ;;  %v530_v41 = vmul.f32 0.0078125, %v510_v28  ;;  %v571_v46 = vmul.f32 %v1883_v33, %v2504_v36  ;;  %v615_v54 = vadd.f32 %v2584_v24, %v592_v40  ;;  %v1852_v36 = vld [vmem:[#allocation7] sm:$0xff]  }
 0x1d0   : > { %v531_v22 = vmul.f32 0.0078125, %v512_v34  ;;  %1894 = vrsqrt.f32 %v545_v32  ;;  %v2592_v42 = vpack.c.bf16 %v614_v38, %v613_v35  ;;  %v593_v43 = vmul.f32 %v2577_v10, %v570_v39  ;;  %v1858_v38 = vld [vmem:[#allocation7 + $0x18] sm:$0xff]  }
 0x1d1   : > { %v1885_v47 = vpop.eup %1884  ;;  %v546_v48 = vadd.f32 1e-05, %v530_v41  ;;  %v594_v57 = vmul.f32 %v2577_v10, %v571_v46 }
 0x1d2   : > { %v547_v49 = vadd.f32 1e-05, %v531_v22  ;;  %v1887_v50 = vpop.eup %1886  ;;  %v514_v51 = vpop.xlane.xlu1 %513  ;;  %1679 = vmatprep.mubr.bf16.mxu0 %v2592_v42  ;;  %v616_v55 = vadd.f32 %v2584_v24, %v593_v43  ;;  %v572_v56 = vmul.f32 %v1885_v47, %v2506_v37 }
 0x1d3   : > { %v516_v29 = vpop.xlane.xlu0 %515  ;;  %1896 = vrsqrt.f32 %v546_v48  ;;  %v532_v58 = vmul.f32 0.0078125, %v514_v51  ;;  %v573_v60 = vmul.f32 %v1887_v50, %v2512_v44  ;;  %v617_v37 = vadd.f32 %v2584_v24, %v594_v57  ;;  %v1860_v48 = vld [vmem:[#allocation7 + $0x20] sm:$0xff]  }
 0x1d4   : > { %v533_v59 = vmul.f32 0.0078125, %v516_v29  ;;  %1898 = vrsqrt.f32 %v547_v49  ;;  %v630_v63 = vpack.c.bf16 %v616_v55, %v615_v54  ;;  %v595_v0 = vmul.f32 %v2577_v10, %v572_v56 }
 0x1d5   : > { %v1889_v1 = vpop.eup %1888  ;;  %v548_v2 = vadd.f32 1e-05, %v532_v58  ;;  %v596_v11 = vmul.f32 %v2577_v10, %v573_v60  ;;  %v1862_v58 = vld [vmem:[#allocation7 + $0x28] sm:$0xff]  }
 0x1d6   : > { %v549_v3 = vadd.f32 1e-05, %v533_v59  ;;  %v1891_v4 = vpop.eup %1890  ;;  %v518_v7 = vpop.xlane.xlu1 %517  ;;  %1680 = vmatmul.mubr.bf16.vlgmr.msra.gmra.mrb[0].mxu0 %v630_v63  ;;  %v618_v8 = vadd.f32 %v2584_v24, %v595_v0  ;;  %v574_v9 = vmul.f32 %v1889_v1, %v2514_v45  ;;  %v818_v63 = vunpack.c.l.b16 %v2592_v42  ;;  %v1865_v42 = vld [vmem:[#allocation7 + $0x38] sm:$0xff]  }
 0x1d7   : > { %1900 = vrsqrt.f32 %v548_v2  ;;  %v534_v44 = vmul.f32 0.0078125, %v518_v7  ;;  %1716 = vmatpush3.bf16.msra.mxu0 %v1852_v36  ;;  %v575_v17 = vmul.f32 %v1891_v4, %v2520_v52  ;;  %v619_v45 = vadd.f32 %v2584_v24, %v596_v11  ;;  %v1856_v52 = vld [vmem:[#allocation7 + $0x10] sm:$0xff]  }
 0x1d8   : > { %1902 = vrsqrt.f32 %v549_v3  ;;  %1717 = vmatprep.subr.bf16.mxu0 %v2181_v27  ;;  %v631_v18 = vpack.c.bf16 %v618_v8, %v617_v37  ;;  %v597_v19 = vmul.f32 %v2577_v10, %v574_v9  ;;  %v1864_v2 = vld [vmem:[#allocation7 + $0x30] sm:$0xff]   ;;  %v1867_v9 = vld [vmem:[#allocation9 + $0x8] sm:$0xff]  }
 0x1d9   : > { %v1893_v20 = vpop.eup %1892  ;;  %v550_v14 = vadd.f32 1e-05, %v534_v44  ;;  %v598_v25 = vmul.f32 %v2577_v10, %v575_v17  ;;  %v1868_v11 = vld [vmem:[#allocation9 + $0x10] sm:$0xff]   ;;  %v1869_v44 = vld [vmem:[#allocation9 + $0x18] sm:$0xff]   ;;  %v1871_v17 = vld [vmem:[#allocation9 + $0x28] sm:$0xff]  }
 0x1da   : > { %v1895_v23 = vpop.eup %1894  ;;  %1683 = vmatprep.mubr.bf16.mxu0 %v631_v18  ;;  %v620_v21 = vadd.f32 %v2584_v24, %v597_v19  ;;  %v576_v15 = vmul.f32 %v1893_v20, %v2523_v53  ;;  %v819_v49 = vunpack.c.l.b16 %v631_v18  ;;  %v1872_v18 = vld [vmem:[#allocation9 + $0x30] sm:$0xff]   ;;  %v1873_v19 = vld [vmem:[#allocation9 + $0x38] sm:$0xff]  }
 0x1db   : > { %1904 = vrsqrt.f32 %v550_v14  ;;  %1718 = vmatpush3.bf16.msra.mxu0 %v1854_v16  ;;  %v577_v26 = vmul.f32 %v1895_v23, %v2530_v61  ;;  %v621_v28 = vadd.f32 %v2584_v24, %v598_v25  ;;  %v1870_v16 = vld [vmem:[#allocation9 + $0x20] sm:$0xff]  }
 0x1dc   : > { %1719 = vmatprep.subr.bf16.mxu0 %v2181_v27  ;;  %v632_v30 = vpack.c.bf16 %v620_v21, %v619_v45  ;;  %v599_v31 = vmul.f32 %v2577_v10, %v576_v15 }
 0x1dd   : > { %v1897_v32 = vpop.eup %1896  ;;  %v600_v35 = vmul.f32 %v2577_v10, %v577_v26 }
 0x1de   : > { %v1899_v33 = vpop.eup %1898  ;;  %1684 = vmatmul.mubr.bf16.gmra.mrb[4].mxu0 %v632_v30  ;;  %v622_v34 = vadd.f32 %v2584_v24, %v599_v31  ;;  %v578_v53 = vmul.f32 %v1897_v32, %v2533_v62  ;;  %v2183_v32 = vmov 1966171168  }
 0x1df   : > { %1720 = vmatpush3.bf16.msra.mxu0 %v1856_v52  ;;  %v579_v61 = vmul.f32 %v1899_v33, %v2540_v5  ;;  %v623_v43 = vadd.f32 %v2584_v24, %v600_v35  ;;  %v1028_v33 = vunpack.c.l.s4 %v2183_v32 }
 0x1e0   : > { %1721 = vmatprep.subr.bf16.mxu0 %v2181_v27  ;;  %v633_v39 = vpack.c.bf16 %v622_v34, %v621_v28  ;;  %v601_v40 = vmul.f32 %v2577_v10, %v578_v53  ;;  %v1030_v28 = vlaneseq }
 0x1e1   : > { %v1901_v41 = vpop.eup %1900  ;;  %v602_v47 = vmul.f32 %v2577_v10, %v579_v61  ;;  %v1029_v53 = vunpack.c.0.s8 %v1028_v33 }
 0x1e2   : > { %v1903_v22 = vpop.eup %1902  ;;  %1687 = vmatprep.mubr.bf16.mxu0 %v633_v39  ;;  %v624_v46 = vadd.f32 %v2584_v24, %v601_v40  ;;  %v580_v62 = vmul.f32 %v1901_v41, %v2543_v6  ;;  %v820_v54 = vunpack.c.l.b16 %v633_v39  ;;  %v1031_v35 = vshrl.u32 %v1030_v28, 7 }
 0x1e3   : > { %1722 = vmatpush3.bf16.msra.mxu0 %v1858_v38  ;;  %v581_v5 = vmul.f32 %v1903_v22, %v2550_v12  ;;  %v625_v55 = vadd.f32 %v2584_v24, %v602_v47  ;;  %v822_v12 = vrot.slane %v819_v49, 7 }
 0x1e4   : > { %1723 = vmatprep.subr.bf16.mxu0 %v2181_v27  ;;  %v634_v50 = vpack.c.bf16 %v624_v46, %v623_v43  ;;  %v603_v51 = vmul.f32 %v2577_v10, %v580_v62  ;;  %v825_v60 = vrot.slane %v820_v54, 6  ;;  %v2653_v39 = vsub.s32 %v1029_v53, %v1031_v35 }
 0x1e5   : > { %v1905_v29 = vpop.eup %1904  ;;  %v604_v57 = vmul.f32 %v2577_v10, %v581_v5  ;;  %v824_v7 = vsel %vm823_vm1, %v822_v12, %v818_v63  ;;  %v2656_v47 = vsub.s32 0, %v1031_v35 }
 0x1e6   : > { %1688 = vmatmul.mubr.bf16.gmra.mrb[8].mxu0 %v634_v50  ;;  %v626_v56 = vadd.f32 %v2584_v24, %v603_v51  ;;  %v582_v6 = vmul.f32 %v1905_v29, %v2553_v13 }
 0x1e7   : > { %1724 = vmatpush3.bf16.msra.mxu0 %v1860_v48  ;;  %v627_v1 = vadd.f32 %v2584_v24, %v604_v57 }
 0x1e8   : > { %1725 = vmatprep.subr.bf16.mxu0 %v2181_v27  ;;  %v635_v59 = vpack.c.bf16 %v626_v56, %v625_v55  ;;  %v605_v36 = vmul.f32 %v2577_v10, %v582_v6  ;;  %v827_v10 = vsel %vm826_vm2, %v825_v60, %v824_v7 }
 0x1ea   : > { %1691 = vmatprep.mubr.bf16.mxu0 %v635_v59  ;;  %v821_v0 = vunpack.c.l.b16 %v635_v59  ;;  %v628_v13 = vadd.f32 %v2584_v24, %v605_v36  ;;  %v1866_v24 = vld [vmem:[#allocation9] sm:$0xff]  }
 0x1eb   : > { %1726 = vmatpush3.bf16.msra.mxu0 %v1862_v58 }
 0x1ec   : > { %v828_v3 = vrot.slane %v821_v0, 5  ;;  %1727 = vmatprep.subr.bf16.mxu0 %v2181_v27  ;;  %v636_v4 = vpack.c.bf16 %v628_v13, %v627_v1 }
 0x1ee   : > { %1692 = vmatmul.mubr.bf16.gmra.mrb[12].mxu0 %v636_v4  ;;  %v830_v37 = vsel %vm829_vm3, %v828_v3, %v827_v10 }
 0x1ef   : > { %1728 = vmatpush3.bf16.msra.mxu0 %v1864_v2  ;;  %v831_v8 = vpack.c.b16 %v830_v37, %v830_v37  ;;  %1731 = vmatprep.mubr.msk.bf16.mxu0 %vm2182_vm0, %v2181_v27 }
 0x1f0   : > { %1729 = vmatprep.subr.bf16.mxu0 %v2181_v27 }
 0x1f1   : > { %1712 = vmatmul.mubr.bf16.vlgmr.msra.gmra.mrb[0].mxu1 %v831_v8 }
 0x1f2   : > { %1751 = vmatprep.mubr.msk.bf16.mxu1 %vm2182_vm0, %v2181_v27  ;;  %1736 = vmatpush3.bf16.msra.mxu1 %v1866_v24 }
 0x1f3   : > { %1730 = vmatpush3.bf16.msra.mxu0 %v1865_v42  ;;  %1737 = vmatprep.subr.bf16.mxu1 %v2181_v27 }
 0x1f6   : > { %1732 = vmatmul.mubr.bf16.vlgmr.msra.gmra.mrb[16].mxu0 %v831_v8  ;;  %1738 = vmatpush3.bf16.msra.mxu1 %v1867_v9 }
 0x1f7   : > { %1739 = vmatprep.subr.bf16.mxu1 %v2181_v27 }
 0x1fa   : > { %1740 = vmatpush3.bf16.msra.mxu1 %v1868_v11 }
 0x1fb   : > { %1741 = vmatprep.subr.bf16.mxu1 %v2181_v27 }
 0x1fe   : > { %1742 = vmatpush3.bf16.msra.mxu1 %v1869_v44 }
 0x1ff   : > { %1743 = vmatprep.subr.bf16.mxu1 %v2181_v27 }
 0x202   : > { %1744 = vmatpush3.bf16.msra.mxu1 %v1870_v16 }
 0x203   : > { %1745 = vmatprep.subr.bf16.mxu1 %v2181_v27 }
 0x206   : > { %1746 = vmatpush3.bf16.msra.mxu1 %v1871_v17 }
 0x207   : > { %1747 = vmatprep.subr.bf16.mxu1 %v2181_v27 }
 0x20a   : > { %1748 = vmatpush3.bf16.msra.mxu1 %v1872_v18 }
 0x20b   : > { %1749 = vmatprep.subr.bf16.mxu1 %v2181_v27 }
 0x20e   : > { %1750 = vmatpush3.bf16.msra.mxu1 %v1873_v19 }
 0x2a9   : > { %v1681_v20 = vpop.f32.mrb[0].mxu0 }
 0x2aa   : > { %v735_v14 = vpop.f32.mrb[1].mxu0 }
 0x2ab   : > { %v1682_v23 = vpop.f32.mrb[2].mxu0 }
 0x2ac   : > { %v738_v45 = vpop.f32.mrb[3].mxu0 }
 0x2b1   : > { %v1685_v21 = vpop.f32.mrb[4].mxu0 }
 0x2b2   : > { %v751_v15 = vpop.f32.mrb[5].mxu0 }
 0x2b3   : > { %v1686_v25 = vpop.f32.mrb[6].mxu0 }
 0x2b4   : > { %v754_v52 = vpop.f32.mrb[7].mxu0 }
 0x2b9   : > { %v1689_v26 = vpop.f32.mrb[8].mxu0 }
 0x2ba   : > { %v767_v30 = vpop.f32.mrb[9].mxu0 }
 0x2bb   : > { %v1690_v31 = vpop.f32.mrb[10].mxu0 }
 0x2bc   : > { %v770_v34 = vpop.f32.mrb[11].mxu0 }
 0x2c1   : > { %v1693_v27 = vpop.f32.mrb[12].mxu0 }
 0x2c2   : > { %v783_v38 = vpop.f32.mrb[13].mxu0 }
 0x2c3   : > { %v1694_v61 = vpop.f32.mrb[14].mxu0 }
 0x2c4   : > { %v786_v40 = vpop.f32.mrb[15].mxu0  ;;  %v915_v41 = vpop.f32.mrb[0].mxu1 }
 0x2c5   : > { %v921_v22 = vmul.f32 0.088388346, %v915_v41  ;;  %v1713_v43 = vpop.f32.mrb[1].mxu1 }
 0x2c6   : > { %v918_v46 = vpop.f32.mrb[2].mxu1 }
 0x2c7   : > { %v1033_v62 = vrot.slane %v921_v22, %v2653_v39  ;;  %v1714_v48 = vpop.f32.mrb[3].mxu1 }
 0x2c9   : > { %v1034_v5 = vcombine.high %v1033_v62, %v1033_v62  ;;  %v1041_v49 = vrot.slane %v1033_v62, %v2653_v39  ;;  %v1020_v50 = vpop.f32.mrb[16].mxu0 }
 0x2ca   : > { %v1215_v51 = vpack.c.bf16 %v1020_v50, %v1020_v50  ;;  %v1733_v29 = vpop.f32.mrb[17].mxu0 }
 0x2cb   : > { %v1048_v54 = vrot.slane %v1034_v5, %v2653_v39  ;;  %v1049_v55 = vcombine.high %v1041_v49, %v1041_v49  ;;  %v1054_v56 = vrot.slane %v1041_v49, %v2656_v47  ;;  %v1023_v6 = vpop.f32.mrb[18].mxu0 }
 0x2cc   : > { %v1734_v57 = vpop.f32.mrb[19].mxu0  ;;  %1752 = vmatmul.mubr.bf16.vlgmr.msra.gmra.mrb[4].mxu1 %v1215_v51 }
 0x2cd   : > { %v1050_v58 = vcombine.high %v1048_v54, %v1048_v54  ;;  %v1058_v12 = vrot.slane %v1048_v54, %v2656_v47  ;;  %v1062_v59 = vrot.slane %v1049_v55, %v2656_v47  ;;  %v1072_v36 = vmul.f32 %v1054_v56, %v738_v45 }
 0x2ce   : > { %v1071_v60 = vmul.f32 %v1054_v56, %v735_v14  ;;  %v1074_v63 = vmul.f32 %v1682_v23, %v1054_v56  ;;  %v1073_v0 = vmul.f32 %v1681_v20, %v1054_v56 }
 0x2cf   : > { %1089 = vadd.xlane.f32.xlu1 %v1072_v36  ;;  %v1076_v1 = vmul.f32 %v1058_v12, %v754_v52  ;;  %v1075_v13 = vmul.f32 %v1058_v12, %v751_v15  ;;  %v1078_v2 = vmul.f32 %v1686_v25, %v1058_v12  ;;  %v1077_v3 = vmul.f32 %v1685_v21, %v1058_v12 }
 0x2d0   : > { %1087 = vadd.xlane.f32.xlu0 %v1071_v60  ;;  %v1082_v4 = vmul.f32 %v1690_v31, %v1062_v59  ;;  %v1079_v7 = vmul.f32 %v1062_v59, %v767_v30  ;;  %v1080_v10 = vmul.f32 %v1062_v59, %v770_v34  ;;  %v1081_v37 = vmul.f32 %v1689_v26, %v1062_v59 }
 0x2d1   : > { %v1066_v8 = vrot.slane %v1050_v58, %v2656_v47 }
 0x2d3   : > { %1093 = vadd.xlane.f32.xlu1 %v1074_v63  ;;  %v1083_v42 = vmul.f32 %v1066_v8, %v783_v38  ;;  %v1084_v24 = vmul.f32 %v1066_v8, %v786_v40  ;;  %v1085_v9 = vmul.f32 %v1693_v27, %v1066_v8  ;;  %v1086_v11 = vmul.f32 %v1694_v61, %v1066_v8 }
 0x2d4   : > { %1091 = vadd.xlane.f32.xlu0 %v1073_v0 }
 0x2d7   : > { %1097 = vadd.xlane.f32.xlu1 %v1076_v1 }
 0x2d8   : > { %1095 = vadd.xlane.f32.xlu0 %v1075_v13 }
 0x2db   : > { %1101 = vadd.xlane.f32.xlu1 %v1078_v2 }
 0x2dc   : > { %1099 = vadd.xlane.f32.xlu0 %v1077_v3 }
 0x2df   : > { %1109 = vadd.xlane.f32.xlu1 %v1082_v4 }
 0x2e0   : > { %1103 = vadd.xlane.f32.xlu0 %v1079_v7 }
 0x2e3   : > { %1105 = vadd.xlane.f32.xlu1 %v1080_v10 }
 0x2e4   : > { %1107 = vadd.xlane.f32.xlu0 %v1081_v37 }
 0x2e7   : > { %1113 = vadd.xlane.f32.xlu1 %v1084_v24 }
 0x2e8   : > { %1111 = vadd.xlane.f32.xlu0 %v1083_v42 }
 0x2eb   : > { %1117 = vadd.xlane.f32.xlu1 %v1086_v11 }
 0x2ec   : > { %1115 = vadd.xlane.f32.xlu0 %v1085_v9 }
 0x35c   : > { %v1090_v16 = vpop.xlane.xlu1 %1089 }
 0x35d   : > { %v1088_v44 = vpop.xlane.xlu0 %1087  ;;  %v1591_v25 = vmul.f32 -1.442695, %v1090_v16 }
 0x35e   : > { %v1590_v26 = vmul.f32 -1.442695, %v1088_v44 }
 0x35f   : > { %1906 = vpow2.f32 %v1591_v25 }
 0x360   : > { %v1094_v18 = vpop.xlane.xlu1 %1093  ;;  %1908 = vpow2.f32 %v1590_v26 }
 0x361   : > { %v1092_v17 = vpop.xlane.xlu0 %1091  ;;  %v1593_v30 = vmul.f32 -1.442695, %v1094_v18 }
 0x362   : > { %v1592_v31 = vmul.f32 -1.442695, %v1092_v17 }
 0x363   : > { %1910 = vpow2.f32 %v1593_v30 }
 0x364   : > { %v1098_v20 = vpop.xlane.xlu1 %1097  ;;  %1912 = vpow2.f32 %v1592_v31 }
 0x365   : > { %v1096_v19 = vpop.xlane.xlu0 %1095  ;;  %v1595_v32 = vmul.f32 -1.442695, %v1098_v20 }
 0x366   : > { %v1594_v33 = vmul.f32 -1.442695, %v1096_v19 }
 0x367   : > { %1914 = vpow2.f32 %v1595_v32 }
 0x368   : > { %v1102_v23 = vpop.xlane.xlu1 %1101  ;;  %1916 = vpow2.f32 %v1594_v33 }
 0x369   : > { %v1100_v14 = vpop.xlane.xlu0 %1099  ;;  %v1597_v34 = vmul.f32 -1.442695, %v1102_v23  ;;  %v1907_v62 = vpop.eup %1906 }
 0x36a   : > { %v1596_v35 = vmul.f32 -1.442695, %v1100_v14  ;;  %v1909_v5 = vpop.eup %1908  ;;  %v1168_v29 = vadd.f32 1.0, %v1907_v62 }
 0x36b   : > { %1918 = vpow2.f32 %v1597_v34  ;;  %v1167_v55 = vadd.f32 1.0, %v1909_v5 }
 0x36c   : > { %v1110_v21 = vpop.xlane.xlu1 %1109  ;;  %1920 = vpow2.f32 %v1596_v35 }
 0x36d   : > { %v1104_v45 = vpop.xlane.xlu0 %1103  ;;  %v1601_v27 = vmul.f32 -1.442695, %v1110_v21  ;;  %v1911_v50 = vpop.eup %1910 }
 0x36e   : > { %v1598_v38 = vmul.f32 -1.442695, %v1104_v45  ;;  %v1913_v51 = vpop.eup %1912  ;;  %v1170_v6 = vadd.f32 1.0, %v1911_v50 }
 0x36f   : > { %1922 = vpow2.f32 %v1601_v27  ;;  %v1169_v58 = vadd.f32 1.0, %v1913_v51 }
 0x370   : > { %v1106_v52 = vpop.xlane.xlu1 %1105  ;;  %1924 = vpow2.f32 %v1598_v38 }
 0x371   : > { %v1108_v15 = vpop.xlane.xlu0 %1107  ;;  %v1599_v61 = vmul.f32 -1.442695, %v1106_v52  ;;  %v1915_v54 = vpop.eup %1914 }
 0x372   : > { %v1600_v40 = vmul.f32 -1.442695, %v1108_v15  ;;  %v1917_v56 = vpop.eup %1916  ;;  %v1172_v59 = vadd.f32 1.0, %v1915_v54 }
 0x373   : > { %1926 = vpow2.f32 %v1599_v61  ;;  %v1171_v60 = vadd.f32 1.0, %v1917_v56 }
 0x374   : > { %v1114_v53 = vpop.xlane.xlu1 %1113  ;;  %1928 = vpow2.f32 %v1600_v40 }
 0x375   : > { %v1112_v28 = vpop.xlane.xlu0 %1111  ;;  %v1603_v22 = vmul.f32 -1.442695, %v1114_v53  ;;  %v1919_v57 = vpop.eup %1918 }
 0x376   : > { %v1602_v46 = vmul.f32 -1.442695, %v1112_v28  ;;  %v1921_v12 = vpop.eup %1920  ;;  %v1174_v0 = vadd.f32 1.0, %v1919_v57 }
 0x377   : > { %1930 = vpow2.f32 %v1603_v22  ;;  %v1173_v13 = vadd.f32 1.0, %v1921_v12 }
 0x378   : > { %v1118_v43 = vpop.xlane.xlu1 %1117  ;;  %1932 = vpow2.f32 %v1602_v46 }
 0x379   : > { %v1116_v41 = vpop.xlane.xlu0 %1115  ;;  %v1605_v49 = vmul.f32 -1.442695, %v1118_v43  ;;  %v1923_v36 = vpop.eup %1922 }
 0x37a   : > { %v1604_v48 = vmul.f32 -1.442695, %v1116_v41  ;;  %v1925_v63 = vpop.eup %1924  ;;  %v1178_v3 = vadd.f32 1.0, %v1923_v36 }
 0x37b   : > { %v1175_v7 = vadd.f32 1.0, %v1925_v63 }
 0x37c   : > { %1934 = vpow2.f32 %v1604_v48 }
 0x37d   : > { %1936 = vpow2.f32 %v1605_v49  ;;  %v1927_v1 = vpop.eup %1926 }
 0x37e   : > { %1938 = vrcp.f32 %v1168_v29  ;;  %v1929_v2 = vpop.eup %1928  ;;  %v1176_v37 = vadd.f32 1.0, %v1927_v1  ;;  %v1614_v29 = vld [vmem:[%s2736_s7] ss:$0 sm:$0xff] }
 0x37f   : > { %1940 = vrcp.f32 %v1167_v55  ;;  %v1177_v42 = vadd.f32 1.0, %v1929_v2 }
 0x380   : > { %1942 = vrcp.f32 %v1170_v6 }
 0x381   : > { %1944 = vrcp.f32 %v1169_v58  ;;  %v1931_v4 = vpop.eup %1930 }
 0x382   : > { %1946 = vrcp.f32 %v1172_v59  ;;  %v1933_v10 = vpop.eup %1932  ;;  %v1180_v9 = vadd.f32 1.0, %v1931_v4 }
 0x383   : > { %1948 = vrcp.f32 %v1171_v60  ;;  %v1179_v11 = vadd.f32 1.0, %v1933_v10 }
 0x384   : > { %1950 = vrcp.f32 %v1174_v0 }
 0x385   : > { %1952 = vrcp.f32 %v1173_v13 }
 0x386   : > { %v1935_v8 = vpop.eup %1934  ;;  %1954 = vrcp.f32 %v1178_v3 }
 0x387   : > { %v1937_v24 = vpop.eup %1936  ;;  %1956 = vrcp.f32 %v1175_v7  ;;  %v1181_v16 = vadd.f32 1.0, %v1935_v8 }
 0x388   : > { %v1939_v44 = vpop.eup %1938  ;;  %1958 = vrcp.f32 %v1176_v37  ;;  %v1182_v18 = vadd.f32 1.0, %v1937_v24 }
 0x389   : > { %v1941_v17 = vpop.eup %1940  ;;  %1960 = vrcp.f32 %v1177_v42 }
 0x38a   : > { %v1943_v19 = vpop.eup %1942  ;;  %1962 = vrcp.f32 %v1180_v9 }
 0x38b   : > { %v1945_v20 = vpop.eup %1944  ;;  %1964 = vrcp.f32 %v1179_v11 }
 0x38c   : > { %v1947_v14 = vpop.eup %1946  ;;  %1966 = vrcp.f32 %v1181_v16  ;;  %v1970_v16 = vld [vmem:[%s2439_s26] sm:$0xff] }
 0x38d   : > { %v1949_v45 = vpop.eup %1948  ;;  %1968 = vrcp.f32 %v1182_v18  ;;  %v1971_v18 = vld [vmem:[%s2439_s26 + $0x8] sm:$0xff] }
 0x38e   : > { %v1951_v25 = vpop.eup %1950 }
 0x38f   : > { %v1953_v26 = vpop.eup %1952 }
 0x390   : > { %v1955_v33 = vpop.eup %1954 }
 0x391   : > { %v1957_v28 = vpop.eup %1956 }
 0x392   : > { %v1959_v27 = vpop.eup %1958 }
 0x393   : > { %v1961_v38 = vpop.eup %1960 }
 0x394   : > { %v1963_v22 = vpop.eup %1962 }
 0x395   : > { %v1965_v5 = vpop.eup %1964 }
 0x396   : > { %v1967_v54 = vpop.eup %1966 }
 0x397   : > { %v1969_v58 = vpop.eup %1968 }
 0x39f   : > { %v1314_v23 = vpop.f32.mrb[4].mxu1 }
 0x3a0   : > { %v1327_v21 = vrot.slane %v1314_v23, %v2653_v39  ;;  %v1753_v15 = vpop.f32.mrb[5].mxu1  ;;  %v1973_v23 = vld [vmem:[%s2439_s26 + $0x18] sm:$0xff] }
 0x3a1   : > { %v1317_v52 = vpop.f32.mrb[6].mxu1 }
 0x3a2   : > { %v1328_v30 = vcombine.high %v1327_v21, %v1327_v21  ;;  %v1335_v31 = vrot.slane %v1327_v21, %v2653_v39  ;;  %v1754_v32 = vpop.f32.mrb[7].mxu1  ;;  %v1974_v21 = vld [vmem:[%s2439_s26 + $0x20] sm:$0xff] }
 0x3a4   : > { %v1342_v34 = vrot.slane %v1328_v30, %v2653_v39  ;;  %v1343_v53 = vcombine.high %v1335_v31, %v1335_v31  ;;  %v1348_v35 = vrot.slane %v1335_v31, %v2656_v47  ;;  %v1977_v31 = vld [vmem:[%s2439_s26 + $0x38] sm:$0xff] }
 0x3a6   : > { %v1344_v61 = vcombine.high %v1342_v34, %v1342_v34  ;;  %v1352_v40 = vrot.slane %v1342_v34, %v2656_v47  ;;  %v1356_v41 = vrot.slane %v1343_v53, %v2656_v47  ;;  %v1365_v43 = vmul.f32 %v1941_v17, %v1348_v35  ;;  %v1979_v34 = vld [vmem:[%s2439_s26 + $0x48] sm:$0xff] }
 0x3a7   : > { %v1366_v46 = vmul.f32 %v1939_v44, %v1348_v35  ;;  %v1367_v62 = vmul.f32 %v1945_v20, %v1348_v35  ;;  %v1368_v48 = vmul.f32 %v1943_v19, %v1348_v35  ;;  %v1972_v20 = vld [vmem:[%s2439_s26 + $0x10] sm:$0xff] }
 0x3a8   : > { %v1360_v39 = vrot.slane %v1344_v61, %v2656_v47  ;;  %v1369_v49 = vmul.f32 %v1949_v45, %v1352_v40  ;;  %v1370_v50 = vmul.f32 %v1947_v14, %v1352_v40  ;;  %v1371_v51 = vmul.f32 %v1953_v26, %v1352_v40  ;;  %v1976_v26 = vld [vmem:[%s2439_s26 + $0x30] sm:$0xff] }
 0x3a9   : > { %v1372_v55 = vmul.f32 %v1951_v25, %v1352_v40  ;;  %v1373_v56 = vmul.f32 %v1957_v28, %v1356_v41  ;;  %v1374_v6 = vmul.f32 %v1959_v27, %v1356_v41  ;;  %v1375_v57 = vmul.f32 %v1961_v38, %v1356_v41  ;;  %v1975_v25 = vld [vmem:[%s2439_s26 + $0x28] sm:$0xff]  ;;  %v1980_v35 = vld [vmem:[%s2439_s26 + $0x50] sm:$0xff]  ;;  %v1981_v38 = vld [vmem:[%s2439_s26 + $0x58] sm:$0xff] }
 0x3aa   : > { %v1376_v12 = vmul.f32 %v1955_v33, %v1356_v41  ;;  %v1377_v59 = vmul.f32 %v1965_v5, %v1360_v39  ;;  %v1378_v36 = vmul.f32 %v1963_v22, %v1360_v39  ;;  %v1379_v60 = vmul.f32 %v1967_v54, %v1360_v39  ;;  %v1978_v33 = vld [vmem:[%s2439_s26 + $0x40] sm:$0xff]  ;;  %v1983_v22 = vld [vmem:[%s2439_s26 + $0x68] sm:$0xff] }
 0x3ab   : > { %v1380_v63 = vmul.f32 %v1969_v58, %v1360_v39  ;;  %v1388_v47 = vadd.f32 %v1614_v29, %v1365_v43  ;;  %v1389_v0 = vadd.f32 %v1614_v29, %v1366_v46  ;;  %v1390_v1 = vadd.f32 %v1614_v29, %v1367_v62  ;;  %v1982_v40 = vld [vmem:[%s2439_s26 + $0x60] sm:$0xff]  ;;  %v1984_v46 = vld [vmem:[%s2439_s26 + $0x70] sm:$0xff] }
 0x3ac   : > { %v1391_v13 = vadd.f32 %v1614_v29, %v1368_v48  ;;  %v1392_v2 = vadd.f32 %v1614_v29, %v1369_v49  ;;  %v1393_v3 = vadd.f32 %v1614_v29, %v1370_v50  ;;  %v1394_v4 = vadd.f32 %v1614_v29, %v1371_v51  ;;  %v1985_v48 = vld [vmem:[%s2439_s26 + $0x78] sm:$0xff] }
 0x3ad   : > { %v1395_v7 = vadd.f32 %v1614_v29, %v1372_v55  ;;  %v1396_v10 = vadd.f32 %v1614_v29, %v1373_v56  ;;  %v1397_v37 = vadd.f32 %v1614_v29, %v1374_v6  ;;  %v1398_v8 = vadd.f32 %v1614_v29, %v1375_v57 }
 0x3ae   : > { %v1399_v42 = vadd.f32 %v1614_v29, %v1376_v12  ;;  %v1400_v24 = vadd.f32 %v1614_v29, %v1377_v59  ;;  %v1401_v9 = vadd.f32 %v1614_v29, %v1378_v36  ;;  %v1402_v11 = vadd.f32 %v1614_v29, %v1379_v60 }
 0x3af   : > { %v1403_v44 = vadd.f32 %v1614_v29, %v1380_v63  ;;  %v1404_v17 = vadd.f32 %v1970_v16, %v1388_v47  ;;  %v1405_v19 = vadd.f32 %v1971_v18, %v1389_v0  ;;  %v1406_v14 = vadd.f32 %v1972_v20, %v1390_v1 }
 0x3b0   : > { %v1407_v45 = vadd.f32 %v1973_v23, %v1391_v13  ;;  %v1408_v15 = vadd.f32 %v1974_v21, %v1392_v2  ;;  %v1409_v52 = vadd.f32 %v1975_v25, %v1393_v3  ;;  %v1410_v30 = vadd.f32 %v1976_v26, %v1394_v4 }
 0x3b1   : > { %v1411_v32 = vadd.f32 %v1977_v31, %v1395_v7  ;;  %v1412_v28 = vadd.f32 %v1978_v33, %v1396_v10  ;;  %v1413_v53 = vadd.f32 %v1979_v34, %v1397_v37  ;;  %v1414_v27 = vadd.f32 %v1980_v35, %v1398_v8  ;;  %1420 = vst [vmem:[%s2682_s16 - $0x1] sm:$0xfe] %v1404_v17 }
 0x3b2   : > { %1421 = vst [vmem:[%s2682_s16 + $0x7] sm:$0xff] %v1405_v19  ;;  %1422 = vst [vmem:[%s2682_s16 + $0xf] sm:$0xff] %v1406_v14  ;;  %v1415_v61 = vadd.f32 %v1981_v38, %v1399_v42  ;;  %v1416_v41 = vadd.f32 %v1982_v40, %v1400_v24  ;;  %v1417_v43 = vadd.f32 %v1983_v22, %v1401_v9 }
 0x3b3   : > { %v1418_v62 = vadd.f32 %v1984_v46, %v1402_v11  ;;  %1423 = vst [vmem:[%s2682_s16 + $0x17] sm:$0x7f] %v1407_v45  ;;  %1424 = vst [vmem:[%s2682_s16 + $0x1f] sm:$0xfe] %v1408_v15  ;;  %v1419_v5 = vadd.f32 %v1985_v48, %v1403_v44 }
 0x3b4   : > { %1425 = vst [vmem:[%s2682_s16 + $0x27] sm:$0xff] %v1409_v52  ;;  %1426 = vst [vmem:[%s2682_s16 + $0x2f] sm:$0xff] %v1410_v30 }
 0x3b5   : > { %1427 = vst [vmem:[%s2682_s16 + $0x37] sm:$0x7f] %v1411_v32  ;;  %1428 = vst [vmem:[%s2682_s16 + $0x3f] sm:$0xfe] %v1412_v28 }
 0x3b6   : > { %1429 = vst [vmem:[%s2682_s16 + $0x47] sm:$0xff] %v1413_v53  ;;  %1430 = vst [vmem:[%s2682_s16 + $0x4f] sm:$0xff] %v1414_v27 }
 0x3b7   : > { %1431 = vst [vmem:[%s2682_s16 + $0x57] sm:$0x7f] %v1415_v61  ;;  %1432 = vst [vmem:[%s2682_s16 + $0x5f] sm:$0xfe] %v1416_v41 }
 0x3b8   : > { %1433 = vst [vmem:[%s2682_s16 + $0x67] sm:$0xff] %v1417_v43  ;;  %1434 = vst [vmem:[%s2682_s16 + $0x6f] sm:$0xff] %v1418_v62 }
 0x3b9   : > { %1435 = vst [vmem:[%s2682_s16 + $0x77] sm:$0x7f] %v1419_v5 }
 0x3ba PF: > { %p20_p11 = scmp.ge.s32.totalorder %s2383_s25, 4   ;;  %s2753_s27 = smov %s2162_s28 }
 0x3bb   : > { %s2754_s28 = smov %s2166_s29  ;;  %s2755_s29 = smov %s2394_s23 }
 0x3bc   : > { %s2756_s30 = smov %s2383_s25  ;;  %22 = sbr.rel (!%p20_p11) target bundleno = 5 (0x5), region = 108 }
 0x3c3   :  { %1460 = vsyncpa [#allocation3], 1 }
 0x3c4   :  { %1462 = vsyncpa [#allocation3 + $0x1], 1 }
 0x3c5   :  { %1463 = vsyncpa [#allocation5], 1 }
 0x3c6   :  { %1464 = vsyncpa [#allocation8], 1 }

</bundles_post_ra>
